<compile_context>
chip_gen: v7x
topology: tpu7x:2x2x1
jax: 0.10.0
libtpu: 0.0.40
codegen_flags: <defaults>
</compile_context>

<pallas_src>
import math

import jax
import jax.numpy as jnp
from jax import lax
from jax.experimental import pallas as pl
from jax.experimental.pallas import tpu as pltpu


_NEG_INF = -1e9                      # matches scores.masked_fill(mask, -1e9)

_VMEM_LIMIT_CACHE = None


def _vmem_limit_bytes():
    """Per-generation VMEM budget: ~75% of physical VMEM (96 MiB on v5e/v6e,
    48 MiB on v7x), instead of a fixed constant."""
    global _VMEM_LIMIT_CACHE
    if _VMEM_LIMIT_CACHE is None:
        try:
            cap = int(pltpu.get_tpu_info().vmem_capacity_bytes)
        except Exception:
            cap = 64 * 1024 * 1024
        _VMEM_LIMIT_CACHE = max(32 * 1024 * 1024, (cap * 3) // 4)
    return _VMEM_LIMIT_CACHE


def _pick_tile(dim, preferred):
    """Largest convenient tile <= preferred that divides dim (or dim itself)."""
    if dim <= preferred:
        return dim
    for t in (preferred, 512, 256, 128):
        if t <= preferred and dim % t == 0:
            return t
    return dim


# ---------------------------------------------------------------------------
# Row-tiled matmul:  (M, Din) @ (Din, Dout) -> (M, Dout)
# Used for the fused QKV projection (Dout = 3D), KV projection (2D) and the
# output / query projections (D). MXU operands are cast to bf16 in-kernel
# (f32 accumulation) unless mxu_dtype=float32.
# ---------------------------------------------------------------------------
def _matmul_kernel_factory(mxu_dtype):
    def kernel(x_ref, w_ref, o_ref):
        o_ref[...] = jnp.dot(
            x_ref[...].astype(mxu_dtype),
            w_ref[...].astype(mxu_dtype),
            preferred_element_type=jnp.float32).astype(o_ref.dtype)
    return kernel


def _matmul(x, w, mxu_dtype, out_dtype=jnp.float32):
    M, d_in = x.shape
    d_out = w.shape[1]
    tm = _pick_tile(M, 512)
    grid = (pl.cdiv(M, tm),)
    return pl.pallas_call(
        _matmul_kernel_factory(mxu_dtype),
        out_shape=jax.ShapeDtypeStruct((M, d_out), out_dtype),
        grid_spec=pltpu.PrefetchScalarGridSpec(
            num_scalar_prefetch=0,
            grid=grid,
            in_specs=[
                pl.BlockSpec((tm, d_in), lambda m: (m, 0)),
                # weight block is grid-invariant along the row-tile axis
                pl.BlockSpec((d_in, d_out), lambda m: (0, 0)),
            ],
            out_specs=pl.BlockSpec((tm, d_out), lambda m: (m, 0)),
        ),
        compiler_params=pltpu.CompilerParams(
            dimension_semantics=("parallel",),
            vmem_limit_bytes=_vmem_limit_bytes()),
    )(x, w)


# ---------------------------------------------------------------------------
# Flash-style attention core.
#   grid = (batch, q-tile, kv-tile), kv axis last + "arbitrary";
#   online-softmax accumulators (m, l, acc) in VMEM scratch;
#   causal mask generated in-kernel, key-padding mask read as an O(S) row;
#   heads handled batched per block ((H, tq, dk) after an in-kernel einshape).
# ---------------------------------------------------------------------------
def _flash_kernel_factory(H, tq, tk, dk, scale, causal, mxu_dtype):
    def kernel(q_ref, k_ref, v_ref, pad_ref, o_ref, m_sc, l_sc, acc_sc):
        ki = pl.program_id(2)

        @pl.when(ki == 0)
        def _():
            m_sc[...] = jnp.full_like(m_sc, -jnp.inf)
            l_sc[...] = jnp.zeros_like(l_sc)
            acc_sc[...] = jnp.zeros_like(acc_sc)

        # (1, tq, 1, H, dk) -> (H, tq, dk): in-kernel head-major swap on the
        # XLU (no wrapper-side HBM transpose round trips).
        q = pltpu.einshape("shd->hsd",
                           q_ref[...].reshape(tq, H, dk)).astype(mxu_dtype)
        k = pltpu.einshape("shd->hsd",
                           k_ref[...].reshape(tk, H, dk)).astype(mxu_dtype)
        v = pltpu.einshape("shd->hsd",
                           v_ref[...].reshape(tk, H, dk)).astype(mxu_dtype)

        # head-batched scores on the MXU (bf16 operands, f32 accumulation)
        s = jnp.einsum("hqd,hkd->hqk", q, k,
                       preferred_element_type=jnp.float32) * scale

        # masking: key-padding row (True == masked) + in-kernel causal part
        pad_k = pad_ref[0] != 0.0                       # (1, tk)
        if causal:
            qpos = pl.program_id(1) * tq + lax.broadcasted_iota(
                jnp.int32, (tq, tk), 0)
            kpos = ki * tk + lax.broadcasted_iota(jnp.int32, (tq, tk), 1)
            mask = pad_k | (kpos > qpos)                # (tq, tk)
        else:
            mask = pad_k                                # (1, tk)
        s = jnp.where(mask[None], _NEG_INF, s)          # masked_fill(-1e9)

        # online softmax accumulation
        m_prev = m_sc[...]
        m_new = jnp.maximum(m_prev, jnp.max(s, axis=-1, keepdims=True))
        alpha = jnp.exp(m_prev - m_new)
        p = jnp.exp(s - m_new)
        l_sc[...] = alpha * l_sc[...] + jnp.sum(p, axis=-1, keepdims=True)
        acc_sc[...] = alpha * acc_sc[...] + jnp.einsum(
            "hqk,hkd->hqd", p.astype(mxu_dtype), v,
            preferred_element_type=jnp.float32)
        m_sc[...] = m_new

        @pl.when(ki == pl.num_programs(2) - 1)
        def _():
            denom = l_sc[...]
            r = pl.reciprocal(denom, approx=True)
            r = r * (2.0 - denom * r)                   # one Newton step
            ctx = acc_sc[...] * r                       # (H, tq, dk)
            # write ctx back in (tq, H, dk) layout -> merge-heads is free
            o_ref[0] = pltpu.einshape("hsd->shd", ctx).astype(o_ref.dtype)
    return kernel


def _flash_attention(q_arr, kv_arr, key_pad, *, q_slot, k_slot, v_slot,
                     causal, mxu_dtype):
    """q_arr: (B, Sq, Gq, H, dk); kv_arr: (B, Sk, Gk, H, dk) (may be the same
    array as q_arr for self-attention); key_pad: (B, 1, Sk) f32, 1.0 == masked.
    Returns ctx: (B, Sq, H, dk) f32."""
    B, Sq, _, H, dk = q_arr.shape
    Sk = kv_arr.shape[1]
    scale = 1.0 / math.sqrt(dk)
    tq = _pick_tile(Sq, 256)
    tk = _pick_tile(Sk, 512)
    grid = (B, pl.cdiv(Sq, tq), pl.cdiv(Sk, tk))

    in_specs = [
        pl.BlockSpec((1, tq, 1, H, dk), lambda b, qi, ki: (b, qi, q_slot, 0, 0)),
        pl.BlockSpec((1, tk, 1, H, dk), lambda b, qi, ki: (b, ki, k_slot, 0, 0)),
        pl.BlockSpec((1, tk, 1, H, dk), lambda b, qi, ki: (b, ki, v_slot, 0, 0)),
        pl.BlockSpec((1, 1, tk), lambda b, qi, ki: (b, 0, ki)),   # key-pad row
    ]
    out_spec = pl.BlockSpec((1, tq, H, dk), lambda b, qi, ki: (b, qi, 0, 0))

    return pl.pallas_call(
        _flash_kernel_factory(H, tq, tk, dk, scale, causal, mxu_dtype),
        out_shape=jax.ShapeDtypeStruct((B, Sq, H, dk), jnp.float32),
        grid_spec=pltpu.PrefetchScalarGridSpec(
            num_scalar_prefetch=0,
            grid=grid,
            in_specs=in_specs,
            out_specs=out_spec,
            scratch_shapes=[pltpu.VMEM((H, tq, 1), jnp.float32),    # m
                            pltpu.VMEM((H, tq, 1), jnp.float32),    # l
                            pltpu.VMEM((H, tq, dk), jnp.float32)],  # acc
        ),
        compiler_params=pltpu.CompilerParams(
            dimension_semantics=("parallel", "parallel", "arbitrary"),
            vmem_limit_bytes=_vmem_limit_bytes()),
    )(q_arr, kv_arr, kv_arr, key_pad)


def _key_pad(mask, B, S):
    if mask is None:
        return jnp.zeros((B, 1, S), jnp.float32)
    return mask.reshape(B, 1, S).astype(jnp.float32)


# ---------------------------------------------------------------------------
# Full MHA forward paths (projections + masked flash attention + output proj)
# Weights are in PyTorch (out, in) layout; they are pre-transposed / fused in
# the wrapper (done once per call; in a real model this is precomputed).
# ---------------------------------------------------------------------------
def multihead_self_attention(x, wq, wk, wv, wo, num_heads, key_pad_mask=None,
                             causal=False, mxu_dtype=jnp.bfloat16):
    """Self-attention: encoder (causal=False) / decoder masked (causal=True)."""
    B, S, D = x.shape
    assert D % num_heads == 0
    dk = D // num_heads

    # fused QKV projection: one (B*S, D) @ (D, 3D) matmul, no activation stack
    w_qkv = jnp.concatenate([wq.T, wk.T, wv.T], axis=1)          # (D, 3D)
    qkv = _matmul(x.reshape(B * S, D), w_qkv, mxu_dtype, out_dtype=mxu_dtype)
    qkv = qkv.reshape(B, S, 3, num_heads, dk)                     # free reshape

    pad = _key_pad(key_pad_mask, B, S)
    ctx = _flash_attention(qkv, qkv, pad, q_slot=0, k_slot=1, v_slot=2,
                           causal=causal, mxu_dtype=mxu_dtype)

    # merge heads is a free reshape ((B, S, H, dk) layout), then output proj
    out = _matmul(ctx.reshape(B * S, D), wo.T, mxu_dtype)
    return out.reshape(B, S, D)


def multihead_cross_attention(q_in, kv_in, wq, wk, wv, wo, num_heads,
                              key_pad_mask=None, mxu_dtype=jnp.bfloat16):
    """Decoder cross-attention: queries from tgt stream, keys/values from
    encoder memory, src key-padding mask only."""
    B, Sq, D = q_in.shape
    Sk = kv_in.shape[1]
    dk = D // num_heads

    q = _matmul(q_in.reshape(B * Sq, D), wq.T, mxu_dtype, out_dtype=mxu_dtype)
    q = q.reshape(B, Sq, 1, num_heads, dk)
    w_kv = jnp.concatenate([wk.T, wv.T], axis=1)                  # (D, 2D)
    kv = _matmul(kv_in.reshape(B * Sk, D), w_kv, mxu_dtype, out_dtype=mxu_dtype)
    kv = kv.reshape(B, Sk, 2, num_heads, dk)

    pad = _key_pad(key_pad_mask, B, Sk)
    ctx = _flash_attention(q, kv, pad, q_slot=0, k_slot=0, v_slot=1,
                           causal=False, mxu_dtype=mxu_dtype)

    out = _matmul(ctx.reshape(B * Sq, D), wo.T, mxu_dtype)
    return out.reshape(B, Sq, D)


# ---------------------------------------------------------------------------
# Plain-JAX reference mirroring the PyTorch attention block (masked_fill -1e9)
# ---------------------------------------------------------------------------
def _reference_mha(q_in, kv_in, wq, wk, wv, wo, num_heads, key_pad_mask, causal):
    B, Sq, D = q_in.shape
    Sk = kv_in.shape[1]
    dk = D // num_heads
    Q, K, V = q_in @ wq.T, kv_in @ wk.T, kv_in @ wv.T

    def split(t, S):
        return t.reshape(B, S, num_heads, dk).transpose(0, 2, 1, 3)

    Qh, Kh, Vh = split(Q, Sq), split(K, Sk), split(V, Sk)
    scores = (Qh @ Kh.transpose(0, 1, 3, 2)) / math.sqrt(dk)      # (B,H,Sq,Sk)
    mask = jnp.zeros((B, 1, Sq, Sk), dtype=bool)
    if key_pad_mask is not None:
        mask = mask | key_pad_mask[:, None, None, :]
    if causal:
        mask = mask | jnp.triu(jnp.ones((Sq, Sk), dtype=bool), k=1)
    scores = jnp.where(mask, _NEG_INF, scores)
    attn = jax.nn.softmax(scores, axis=-1)
    ctx = (attn @ Vh).transpose(0, 2, 1, 3).reshape(B, Sq, D)
    return ctx @ wo.T


if __name__ == "__main__":
    B, S_tgt, S_src, D, H = 2, 8, 16, 32, 4

    key = jax.random.PRNGKey(0)
    keys = jax.random.split(key, 10)

    x_tgt = jax.random.normal(keys[0], (B, S_tgt, D), dtype=jnp.float32)
    memory = jax.random.normal(keys[1], (B, S_src, D), dtype=jnp.float32)

    bound = 1.0 / math.sqrt(D)   # PyTorch-Linear-like deterministic init
    def _u(k, shape):
        return jax.random.uniform(k, shape, jnp.float32, -bound, bound)

    wq, wk, wv, wo = [_u(keys[i], (D, D)) for i in range(2, 6)]   # self-attn
    cq, ck, cv, co = [_u(keys[i], (D, D)) for i in range(6, 10)]  # cross-attn

    # Masks built exactly as MachineTranslationModel.forward does:
    #   decoder self-attn: tgt padding mask | causal mask;
    #   cross-attn: src padding mask (keys only).
    tgt_tokens = jnp.array([[5, 3, 7, 2, 9, 0, 0, 0],
                            [4, 9, 1, 6, 8, 2, 7, 0]], dtype=jnp.int32)
    src_tokens = jnp.array(
        [[3, 1, 4, 1, 5, 9, 2, 6, 5, 3, 5, 0, 0, 0, 0, 0],
         [2, 7, 1, 8, 2, 8, 1, 8, 2, 8, 4, 5, 9, 0, 0, 0]], dtype=jnp.int32)
    tgt_pad = tgt_tokens == 0                                     # (B, S_tgt)
    src_pad = src_tokens == 0                                     # (B, S_src)

    # decoder masked self-attention (bf16 MXU operands — the production path)
    out_self = multihead_self_attention(x_tgt, wq, wk, wv, wo, H,
                                        key_pad_mask=tgt_pad, causal=True)
    # same path with f32 MXU operands (tight numerics validation)
    out_self_f32 = multihead_self_attention(x_tgt, wq, wk, wv, wo, H,
                                            key_pad_mask=tgt_pad, causal=True,
                                            mxu_dtype=jnp.float32)
    # cross-attention against encoder memory (src key-padding only)
    out_cross = multihead_cross_attention(x_tgt, memory, cq, ck, cv, co, H,
                                          key_pad_mask=src_pad)
    jax.block_until_ready((out_self, out_self_f32, out_cross))

    ref_self = _reference_mha(x_tgt, x_tgt, wq, wk, wv, wo, H, tgt_pad, True)
    ref_cross = _reference_mha(x_tgt, memory, cq, ck, cv, co, H, src_pad, False)

    assert jnp.allclose(out_self_f32, ref_self, atol=2e-3, rtol=2e-3), \
        float(jnp.max(jnp.abs(out_self_f32 - ref_self)))
    assert jnp.allclose(out_self, ref_self, atol=7e-2, rtol=7e-2), \
        float(jnp.max(jnp.abs(out_self - ref_self)))
    assert jnp.allclose(out_cross, ref_cross, atol=7e-2, rtol=7e-2), \
        float(jnp.max(jnp.abs(out_cross - ref_cross)))

    print("KERNEL_OK")
</pallas_src>

<mosaic_0001>
module attributes {stable_mosaic.version = 11 : i64} {
  func.func @kernel(%arg0: i32, %arg1: memref<16x32xf32, #tpu.memory_space<vmem>>, %arg2: memref<32x96xf32, #tpu.memory_space<vmem>>, %arg3: memref<16x96xbf16, #tpu.memory_space<vmem>>) attributes {dimension_semantics = [#tpu.dimension_semantics<parallel>], iteration_bounds = array<i64: 1>, scalar_prefetch = 0 : i64, scratch_operands = 0 : i64, tpu.core_type = #tpu.core_type<tc>, window_params = [{transform_indices = @transform_0, window_bounds = array<i64: 16, 32>}, {pipeline_mode = #tpu.pipeline_mode<synchronous>, transform_indices = @transform_1, window_bounds = array<i64: 32, 96>}, {transform_indices = @transform_2, window_bounds = array<i64: 16, 96>}]} {
    %c0 = arith.constant 0 : index
    %c0_0 = arith.constant 0 : index
    %0 = vector.load %arg1[%c0, %c0_0] : memref<16x32xf32, #tpu.memory_space<vmem>>, vector<16x32xf32>
    %1 = arith.truncf %0 : vector<16x32xf32> to vector<16x32xbf16>
    %c0_1 = arith.constant 0 : index
    %c0_2 = arith.constant 0 : index
    %2 = vector.load %arg2[%c0_1, %c0_2] : memref<32x96xf32, #tpu.memory_space<vmem>>, vector<32x96xf32>
    %3 = arith.truncf %2 : vector<32x96xf32> to vector<32x96xbf16>
    %cst = arith.constant dense<0.000000e+00> : vector<16x96xf32>
    %4 = tpu.matmul %1, %3, %cst {dimension_numbers = #tpu.dot_dimension_numbers<[1], [0], [0], [1], [0, 0, 1, 1], [], []>} : vector<16x32xbf16>, vector<32x96xbf16>, vector<16x96xf32> -> vector<16x96xf32>
    %5 = arith.truncf %4 : vector<16x96xf32> to vector<16x96xbf16>
    %c0_3 = arith.constant 0 : index
    %c0_4 = arith.constant 0 : index
    %6 = vector.load %arg3[%c0_3, %c0_4] : memref<16x96xbf16, #tpu.memory_space<vmem>>, vector<16x96xbf16>
    tpu.vector_store %arg3[%c0_3, %c0_4], %5 {strides = array<i32>} : memref<16x96xbf16, #tpu.memory_space<vmem>>, vector<16x96xbf16>,
    return
  }
  func.func @transform_0(%arg0: i32) -> (i32, i32) {
    %c0_i32 = arith.constant 0 : i32
    %c0_i32_0 = arith.constant 0 : i32
    return %arg0, %c0_i32 : i32, i32
  }
  func.func @transform_1(%arg0: i32) -> (i32, i32) {
    %c0_i32 = arith.constant 0 : i32
    %c0_i32_0 = arith.constant 0 : i32
    %c0_i32_1 = arith.constant 0 : i32
    return %c0_i32, %c0_i32_0 : i32, i32
  }
  func.func @transform_2(%arg0: i32) -> (i32, i32) {
    %c0_i32 = arith.constant 0 : i32
    %c0_i32_0 = arith.constant 0 : i32
    return %arg0, %c0_i32 : i32, i32
  }
}

</mosaic_0001>

<bundles_post_ra>
// kernel: tpu_custom_call.1
= control target key start
LH: loop header
LB: loop body
LE: loop exit
PB: predicated region body
PF: predicated region fallthrough
CT: control target
= control target key end

     0   :  { %7 = vsyncpa [#allocation3], 0  ;;  %s281_s0 = inlined_call_operand.hbm [shape: f32[16,32], index: 0, kind: input, shape index: {}]   ;;  %s282_s1 = inlined_call_operand.hbm [shape: f32[32,96], index: 1, kind: input, shape index: {}]   ;;  %s283_s2 = inlined_call_operand.hbm [shape: bf16[16,96], index: 2, kind: output, shape index: {}]  }
   0x1   :  { %8 = vsyncpa [#allocation6], 0 }
   0x2   :  { %9 = vsyncpa [#allocation4], 0  ;;  %s221_s9 = smov [#allocation2]   ;;  %s149_s13 = scalar_lea.hbm %s281_s0, 256 }
   0x3   :  { %s15_s10 = sshll.u32 %s221_s9, 4  ;;  %p150_p0 = scmp.ne.s32.totalorder %s281_s0, %s149_s13  ;;  %s16_s10 = int_to_ptr.vmem [resolvable:$true] %s15_s10 }
   0x4   :  { %p153_p1 = scmp.lt.u32.totalorder %s149_s13, %s281_s0 }
   0x6   :  { %p155_p2 = pnand %p153_p1, %p150_p0 }
   0x8   :  { %158 = shalt.err (!%p155_p2)
}
   0x9   :  { %s159_s18 = scalar_lea.vmem %s16_s10, 256  ;;  %p164_p4 = scmp.lt.s32.totalorder %s16_s10, %s16_s10 }
   0xa   :  { %p160_p3 = scmp.ne.s32.totalorder %s16_s10, %s159_s18  ;;  %p165_p5 = scmp.lt.s32.totalorder %s159_s18, %s159_s18 }
   0xc   :  { %p166_p6 = por %p165_p5, %p164_p4 }
   0xe   :  { %p167_p7 = pnand %p166_p6, %p160_p3 }
  0x10   :  { %170 = shalt.err (!%p167_p7)
}
  0x11   :  { %s222_s19 = smov 128   ;;  %s223_s20 = smov 8  }
  0x12   :  { %21 = dma.hbm_to_vmem [thread:$0]  %s281_s0, 256, %s16_s10, [#allocation3], %s222_s19, %s222_s19, %s223_s20  }
  0x13   :  { %s224_s23 = smov [#allocation5]   ;;  %s171_s27 = scalar_lea.hbm %s282_s1, 512 }
  0x14   :  { %s27_s24 = sshll.u32 %s224_s23, 4  ;;  %p172_p8 = scmp.ne.s32.totalorder %s282_s1, %s171_s27  ;;  %s28_s24 = int_to_ptr.vmem [resolvable:$true] %s27_s24 }
  0x15   :  { %p175_p9 = scmp.lt.u32.totalorder %s171_s27, %s282_s1 }
  0x17   :  { %p177_p10 = pnand %p175_p9, %p172_p8 }
  0x19   :  { %180 = shalt.err (!%p177_p10)
}
  0x1a   :  { %s181_s4 = scalar_lea.vmem %s28_s24, 512  ;;  %p186_p12 = scmp.lt.s32.totalorder %s28_s24, %s28_s24 }
  0x1b   :  { %p182_p11 = scmp.ne.s32.totalorder %s28_s24, %s181_s4  ;;  %p187_p13 = scmp.lt.s32.totalorder %s181_s4, %s181_s4 }
  0x1d   :  { %p188_p0 = por %p187_p13, %p186_p12 }
  0x1f   :  { %p189_p1 = pnand %p188_p0, %p182_p11 }
  0x21   :  { %192 = shalt.err (!%p189_p1)
}
  0x22   :  { %33 = dma.hbm_to_vmem [thread:$0]  %s282_s1, 512, %s28_s24, [#allocation6], %s222_s19, %s222_s19, %s223_s20  }
  0x23   :  { %215 = dma.done.wait [#allocation3], 256  }
  0x24   :  { %216 = vsyncadd [#allocation3], 4294967040 }
  0x25   :  { %217 = dma.done.wait [#allocation6], 512  }
  0x26   :  { %218 = vsyncadd [#allocation6], 4294966784  ;;  %v225_v0 = vmov 0.0   ;;  %vm226_vm0 = vmmov 0   ;;  %v44_v1 = vld [vmem:[#allocation5] sm:$0xff]  ;;  %v45_v2 = vld [vmem:[#allocation5 + $0x8] sm:$0xff] }
  0x27   :  { %132 = vmatprep.subr.bf16.mxu0 %v225_v0  ;;  %136 = vmatprep.mubr.msk.bf16.mxu0 %vm226_vm0, %v225_v0  ;;  %v46_v3 = vld [vmem:[#allocation5 + $0x10] sm:$0xff]  ;;  %v48_v4 = vpack.c.bf16 %v45_v2, %v44_v1  ;;  %v47_v5 = vld [vmem:[#allocation5 + $0x18] sm:$0xff]  ;;  %vm50_vm1 = vcmask 261120   ;;  %s227_s1 = smov [#allocation7]   ;;  %vm103_vm2 = vcmask 781312  }
  0x28   :  { %v49_v6 = vpack.c.bf16 %v47_v5, %v46_v3  ;;  %v41_v7 = vld [vmem:[#allocation2] sm:$0xff]  ;;  %v42_v8 = vld [vmem:[#allocation2 + $0x8] sm:$0xff]  ;;  %s111_s6 = sshll.u32 %s227_s1, 4  ;;  %s112_s6 = int_to_ptr.vmem [resolvable:$true] %s111_s6 }
  0x29   :  { %133 = vmatpush3.bf16.msra.mxu0 %v48_v4  ;;  %v43_v9 = vpack.c.bf16 %v42_v8, %v41_v7  ;;  %s193_s7 = scalar_lea.vmem %s112_s6, 128  ;;  %p198_p3 = scmp.lt.s32.totalorder %s112_s6, %s112_s6 }
  0x2a   :  { %134 = vmatprep.subr.bf16.mxu0 %v225_v0  ;;  %p194_p2 = scmp.ne.s32.totalorder %s112_s6, %s193_s7  ;;  %p199_p4 = scmp.lt.s32.totalorder %s193_s7, %s193_s7 }
  0x2c   :  { %p200_p5 = por %p199_p4, %p198_p3 }
  0x2d   :  { %135 = vmatpush3.bf16.msra.mxu0 %v49_v6 }
  0x2e   :  { %p201_p6 = pnand %p200_p5, %p194_p2 }
  0x30   :  { %137 = vmatmul.mubr.msk.bf16.vlgmr.msra.gmra.mrb[0].mxu0 %vm50_vm1, %v43_v9 }
 0x103   :  { %v88_v10 = vpop.f32.mrb[0].mxu0 }
 0x104   :  { %v127_v11 = vpack.c.bf16 %v88_v10, %v88_v10  ;;  %v138_v12 = vpop.f32.mrb[1].mxu0 }
 0x105   :  { %v91_v13 = vpop.f32.mrb[2].mxu0 }
 0x106   :  { %104 = vst.msk [vmem:[#allocation7] sm:$0xf] %vm103_vm2, %v127_v11  ;;  %v128_v14 = vpack.c.bf16 %v91_v13, %v91_v13  ;;  %v139_v15 = vpop.f32.mrb[3].mxu0 }
 0x108   :  { %105 = vst.msk [vmem:[#allocation7 + $0x4] sm:$0xf] %vm103_vm2, %v128_v14 }
 0x109   :  { %204 = shalt.err (!%p201_p6)
}
 0x10a   :  { %s205_s10 = scalar_lea.hbm %s283_s2, 128 }
 0x10b   :  { %p206_p7 = scmp.ne.s32.totalorder %s283_s2, %s205_s10  ;;  %p209_p8 = scmp.lt.u32.totalorder %s205_s10, %s283_s2 }
 0x10d   :  { %p211_p9 = pnand %p209_p8, %p206_p7 }
 0x10f   :  { %214 = shalt.err (!%p211_p9)
}
 0x110   :  { %s228_s15 = smov 64   ;;  %s229_s16 = smov 4  }
 0x111   :  { %117 = dma.vmem_to_hbm [thread:$0]  %s112_s6, 128, %s283_s2, [#allocation4], %s228_s15, %s228_s15, %s229_s16  }
 0x112   :  { %219 = dma.done.wait [#allocation4], 128  }
 0x113   :  { %220 = vsyncadd [#allocation4], 4294967168 }
 0x114   :  { %121 = vsyncpa [#allocation3], 1 }
 0x115   :  { %122 = vsyncpa [#allocation6], 1 }
 0x116   :  { %123 = vsyncpa [#allocation4], 1 }

</bundles_post_ra>
